<compile_context>
chip_gen: v7x
topology: tpu7x:2x2x1
jax: 0.10.0
libtpu: 0.0.40
codegen_flags: <defaults>
</compile_context>

<pallas_src>
import functools

import jax
import jax.numpy as jnp
from jax.experimental import pallas as pl
from jax.experimental.pallas import tpu as pltpu


# ----------------------------------------------------------------------------- kernel

def _gru_encoder_kernel(x_ref, wih_ref, whh_ref, bih_ref, bhh_ref,
                        out_ref, hn_ref, *, seq_len, batch):
    # x_ref:   (S*B, E)   timestep-major flattened embeddings
    # wih_ref: (E, 3H)    input->gates weights, gate order [r | z | n]
    # whh_ref: (H, 3H)    hidden->gates weights, gate order [r | z | n]
    # bih/bhh: (1, 3H)
    # out_ref: (S, B, H)  per-timestep hidden states
    # hn_ref:  (1, B, H)  final hidden state
    H = whh_ref.shape[0]
    w_ih = wih_ref[...]
    w_hh = whh_ref[...]
    b_ih = bih_ref[...]
    b_hh = bhh_ref[...]

    # Fused input projection for every timestep: one big MXU matmul.
    gx_all = (jnp.dot(x_ref[...], w_ih, preferred_element_type=jnp.float32)
              + b_ih)                                                   # (S*B, 3H)

    # Sequential recurrence (inherently serial). Static trip count -> fully
    # unrolled at trace time; h, weights and gate pre-activations never leave VMEM.
    h = jnp.zeros((batch, H), dtype=jnp.float32)
    for t in range(seq_len):
        gx = gx_all[t * batch:(t + 1) * batch, :]                       # (B, 3H) static slice
        gh = jnp.dot(h, w_hh, preferred_element_type=jnp.float32) + b_hh
        r = jax.nn.sigmoid(gx[:, 0:H] + gh[:, 0:H])
        z = jax.nn.sigmoid(gx[:, H:2 * H] + gh[:, H:2 * H])
        n = jnp.tanh(gx[:, 2 * H:3 * H] + r * gh[:, 2 * H:3 * H])
        h = (1.0 - z) * n + z * h
        out_ref[t] = h.astype(out_ref.dtype)
    hn_ref[0] = h.astype(hn_ref.dtype)


def pallas_gru_encoder(x_emb, w_ih, w_hh, b_ih, b_hh):
    """x_emb: (S, B, E) -> (output (S, B, H), h_n (1, B, H)). Single fused kernel."""
    S, B, E = x_emb.shape
    H = w_hh.shape[0]
    G = 3 * H
    kernel = functools.partial(_gru_encoder_kernel, seq_len=S, batch=B)
    out, h_n = pl.pallas_call(
        kernel,
        out_shape=(jax.ShapeDtypeStruct((S, B, H), jnp.float32),
                   jax.ShapeDtypeStruct((1, B, H), jnp.float32)),
        grid=(1,),
        in_specs=[
            pl.BlockSpec((S * B, E), lambda i: (0, 0)),
            pl.BlockSpec((E, G), lambda i: (0, 0)),
            pl.BlockSpec((H, G), lambda i: (0, 0)),
            pl.BlockSpec((1, G), lambda i: (0, 0)),
            pl.BlockSpec((1, G), lambda i: (0, 0)),
        ],
        out_specs=(pl.BlockSpec((S, B, H), lambda i: (0, 0, 0)),
                   pl.BlockSpec((1, B, H), lambda i: (0, 0, 0))),
        compiler_params=pltpu.CompilerParams(dimension_semantics=("arbitrary",)),
    )(x_emb.reshape(S * B, E), w_ih, w_hh, b_ih.reshape(1, G), b_hh.reshape(1, G))
    return out, h_n


# ----------------------------------------------------------------------------- model glue

def encoder_forward(params, tokens):
    """tokens: (S, B) int32 -> (output (S, B, H), h (1, B, H)); matches Encoder.forward."""
    # Embedding gather stays in XLA (see TODO at top of file).
    emb = jnp.take(params["embedding"], tokens, axis=0)                 # (S, B, E)
    return pallas_gru_encoder(emb.astype(jnp.float32),
                              params["w_ih"], params["w_hh"],
                              params["b_ih"], params["b_hh"])


def init_params(key, vocab_size, embedding_size, hidden_size, pad_idx=1):
    k_emb, k_wih, k_whh, k_bih, k_bhh = jax.random.split(key, 5)
    scale = 1.0 / (hidden_size ** 0.5)
    emb = jax.random.normal(k_emb, (vocab_size, embedding_size), jnp.float32) * 0.02
    emb = emb.at[pad_idx].set(0.0)     # nn.Embedding padding_idx row is zero
    # PyTorch stores weight_ih_l0 as (3H, E) with gates stacked [r; z; n]; we keep the
    # transposed (E, 3H) layout so the kernel does row-major x @ W matmuls directly.
    w_ih = jax.random.uniform(k_wih, (embedding_size, 3 * hidden_size), jnp.float32,
                              -scale, scale)
    w_hh = jax.random.uniform(k_whh, (hidden_size, 3 * hidden_size), jnp.float32,
                              -scale, scale)
    b_ih = jax.random.uniform(k_bih, (3 * hidden_size,), jnp.float32, -scale, scale)
    b_hh = jax.random.uniform(k_bhh, (3 * hidden_size,), jnp.float32, -scale, scale)
    return dict(embedding=emb, w_ih=w_ih, w_hh=w_hh, b_ih=b_ih, b_hh=b_hh)


# ----------------------------------------------------------------------------- main

if __name__ == "__main__":
    # Small shapes consistent with the module defaults (embedding_size=32, hidden_size=64,
    # num_layers=1); sequence-first layout as nn.GRU expects (batch_first=False).
    S, B = 8, 2
    vocab_size = 512
    embedding_size = 32
    hidden_size = 64
    pad_idx = 1                       # special_idx['pad']

    key = jax.random.PRNGKey(0)
    k_par, k_tok = jax.random.split(key)
    params = init_params(k_par, vocab_size, embedding_size, hidden_size, pad_idx)
    tokens = jax.random.randint(k_tok, (S, B), 0, vocab_size, dtype=jnp.int32)

    fwd = jax.jit(encoder_forward)
    output, h = fwd(params, tokens)
    jax.block_until_ready((output, h))

    assert output.shape == (S, B, hidden_size), output.shape
    assert h.shape == (1, B, hidden_size), h.shape
    assert bool(jnp.all(jnp.isfinite(output))) and bool(jnp.all(jnp.isfinite(h)))
    print("KERNEL_OK")
</pallas_src>

<mosaic_0001>
module attributes {stable_mosaic.version = 11 : i64} {
  func.func @_gru_encoder_kernel(%arg0: i32, %arg1: memref<16x32xf32, #tpu.memory_space<vmem>>, %arg2: memref<32x192xf32, #tpu.memory_space<vmem>>, %arg3: memref<64x192xf32, #tpu.memory_space<vmem>>, %arg4: memref<1x192xf32, #tpu.memory_space<vmem>>, %arg5: memref<1x192xf32, #tpu.memory_space<vmem>>, %arg6: memref<8x2x64xf32, #tpu.memory_space<vmem>>, %arg7: memref<1x2x64xf32, #tpu.memory_space<vmem>>) attributes {dimension_semantics = [#tpu.dimension_semantics<arbitrary>], iteration_bounds = array<i64: 1>, scalar_prefetch = 0 : i64, scratch_operands = 0 : i64, tpu.core_type = #tpu.core_type<tc>, window_params = [{pipeline_mode = #tpu.pipeline_mode<synchronous>, transform_indices = @transform_0, window_bounds = array<i64: 16, 32>}, {pipeline_mode = #tpu.pipeline_mode<synchronous>, transform_indices = @transform_1, window_bounds = array<i64: 32, 192>}, {pipeline_mode = #tpu.pipeline_mode<synchronous>, transform_indices = @transform_2, window_bounds = array<i64: 64, 192>}, {pipeline_mode = #tpu.pipeline_mode<synchronous>, transform_indices = @transform_3, window_bounds = array<i64: 1, 192>}, {pipeline_mode = #tpu.pipeline_mode<synchronous>, transform_indices = @transform_4, window_bounds = array<i64: 1, 192>}, {pipeline_mode = #tpu.pipeline_mode<synchronous>, transform_indices = @transform_5, window_bounds = array<i64: 8, 2, 64>}, {pipeline_mode = #tpu.pipeline_mode<synchronous>, transform_indices = @transform_6, window_bounds = array<i64: 1, 2, 64>}]} {
    %c0 = arith.constant 0 : index
    %c0_0 = arith.constant 0 : index
    %0 = vector.load %arg2[%c0, %c0_0] : memref<32x192xf32, #tpu.memory_space<vmem>>, vector<32x192xf32>
    %c0_1 = arith.constant 0 : index
    %c0_2 = arith.constant 0 : index
    %1 = vector.load %arg3[%c0_1, %c0_2] : memref<64x192xf32, #tpu.memory_space<vmem>>, vector<64x192xf32>
    %c0_3 = arith.constant 0 : index
    %c0_4 = arith.constant 0 : index
    %2 = vector.load %arg4[%c0_3, %c0_4] : memref<1x192xf32, #tpu.memory_space<vmem>>, vector<1x192xf32>
    %c0_5 = arith.constant 0 : index
    %c0_6 = arith.constant 0 : index
    %3 = vector.load %arg5[%c0_5, %c0_6] : memref<1x192xf32, #tpu.memory_space<vmem>>, vector<1x192xf32>
    %c0_7 = arith.constant 0 : index
    %c0_8 = arith.constant 0 : index
    %4 = vector.load %arg1[%c0_7, %c0_8] : memref<16x32xf32, #tpu.memory_space<vmem>>, vector<16x32xf32>
    %cst = arith.constant dense<0.000000e+00> : vector<16x192xf32>
    %5 = tpu.matmul %4, %0, %cst {dimension_numbers = #tpu.dot_dimension_numbers<[1], [0], [0], [1], [0, 0, 1, 1], [], []>} : vector<16x32xf32>, vector<32x192xf32>, vector<16x192xf32> -> vector<16x192xf32>
    %6 = vector.broadcast %2 : vector<1x192xf32> to vector<16x192xf32>
    %7 = arith.addf %5, %6 : vector<16x192xf32>
    %cst_9 = arith.constant 0.000000e+00 : f32
    %8 = vector.broadcast %cst_9 : f32 to vector<2x64xf32>
    %9 = vector.extract_strided_slice %7 {offsets = [0, 0], sizes = [2, 192], strides = [1, 1]} : vector<16x192xf32> to vector<2x192xf32>
    %cst_10 = arith.constant dense<0.000000e+00> : vector<2x192xf32>
    %10 = tpu.matmul %8, %1, %cst_10 {dimension_numbers = #tpu.dot_dimension_numbers<[1], [0], [0], [1], [0, 0, 1, 1], [], []>} : vector<2x64xf32>, vector<64x192xf32>, vector<2x192xf32> -> vector<2x192xf32>
    %11 = vector.broadcast %3 : vector<1x192xf32> to vector<2x192xf32>
    %12 = arith.addf %10, %11 : vector<2x192xf32>
    %13 = vector.extract_strided_slice %9 {offsets = [0, 0], sizes = [2, 64], strides = [1, 1]} : vector<2x192xf32> to vector<2x64xf32>
    %14 = vector.extract_strided_slice %12 {offsets = [0, 0], sizes = [2, 64], strides = [1, 1]} : vector<2x192xf32> to vector<2x64xf32>
    %15 = arith.addf %13, %14 : vector<2x64xf32>
    %16 = arith.negf %15 : vector<2x64xf32>
    %17 = math.exp %16 : vector<2x64xf32>
    %cst_11 = arith.constant 1.000000e+00 : f32
    %18 = vector.broadcast %cst_11 : f32 to vector<2x64xf32>
    %19 = arith.addf %18, %17 : vector<2x64xf32>
    %20 = arith.divf %18, %19 : vector<2x64xf32>
    %21 = vector.extract_strided_slice %9 {offsets = [0, 64], sizes = [2, 64], strides = [1, 1]} : vector<2x192xf32> to vector<2x64xf32>
    %22 = vector.extract_strided_slice %12 {offsets = [0, 64], sizes = [2, 64], strides = [1, 1]} : vector<2x192xf32> to vector<2x64xf32>
    %23 = arith.addf %21, %22 : vector<2x64xf32>
    %24 = arith.negf %23 : vector<2x64xf32>
    %25 = math.exp %24 : vector<2x64xf32>
    %cst_12 = arith.constant 1.000000e+00 : f32
    %26 = vector.broadcast %cst_12 : f32 to vector<2x64xf32>
    %27 = arith.addf %26, %25 : vector<2x64xf32>
    %28 = arith.divf %26, %27 : vector<2x64xf32>
    %29 = vector.extract_strided_slice %9 {offsets = [0, 128], sizes = [2, 64], strides = [1, 1]} : vector<2x192xf32> to vector<2x64xf32>
    %30 = vector.extract_strided_slice %12 {offsets = [0, 128], sizes = [2, 64], strides = [1, 1]} : vector<2x192xf32> to vector<2x64xf32>
    %31 = arith.mulf %20, %30 : vector<2x64xf32>
    %32 = arith.addf %29, %31 : vector<2x64xf32>
    %33 = math.tanh %32 : vector<2x64xf32>
    %cst_13 = arith.constant 1.000000e+00 : f32
    %34 = vector.broadcast %cst_13 : f32 to vector<2x64xf32>
    %35 = arith.subf %34, %28 : vector<2x64xf32>
    %36 = arith.mulf %35, %33 : vector<2x64xf32>
    %37 = arith.mulf %28, %8 : vector<2x64xf32>
    %38 = arith.addf %36, %37 : vector<2x64xf32>
    %c0_14 = arith.constant 0 : index
    %c0_15 = arith.constant 0 : index
    %c0_16 = arith.constant 0 : index
    %39 = vector.load %arg6[%c0_14, %c0_15, %c0_16] : memref<8x2x64xf32, #tpu.memory_space<vmem>>, vector<1x2x64xf32>
    %40 = vector.shape_cast %39 : vector<1x2x64xf32> to vector<2x64xf32>
    %41 = vector.shape_cast %38 : vector<2x64xf32> to vector<1x2x64xf32>
    tpu.vector_store %arg6[%c0_14, %c0_15, %c0_16], %41 {strides = array<i32>} : memref<8x2x64xf32, #tpu.memory_space<vmem>>, vector<1x2x64xf32>,
    %42 = vector.extract_strided_slice %7 {offsets = [2, 0], sizes = [2, 192], strides = [1, 1]} : vector<16x192xf32> to vector<2x192xf32>
    %cst_17 = arith.constant dense<0.000000e+00> : vector<2x192xf32>
    %43 = tpu.matmul %38, %1, %cst_17 {dimension_numbers = #tpu.dot_dimension_numbers<[1], [0], [0], [1], [0, 0, 1, 1], [], []>} : vector<2x64xf32>, vector<64x192xf32>, vector<2x192xf32> -> vector<2x192xf32>
    %44 = vector.broadcast %3 : vector<1x192xf32> to vector<2x192xf32>
    %45 = arith.addf %43, %44 : vector<2x192xf32>
    %46 = vector.extract_strided_slice %42 {offsets = [0, 0], sizes = [2, 64], strides = [1, 1]} : vector<2x192xf32> to vector<2x64xf32>
    %47 = vector.extract_strided_slice %45 {offsets = [0, 0], sizes = [2, 64], strides = [1, 1]} : vector<2x192xf32> to vector<2x64xf32>
    %48 = arith.addf %46, %47 : vector<2x64xf32>
    %49 = arith.negf %48 : vector<2x64xf32>
    %50 = math.exp %49 : vector<2x64xf32>
    %cst_18 = arith.constant 1.000000e+00 : f32
    %51 = vector.broadcast %cst_18 : f32 to vector<2x64xf32>
    %52 = arith.addf %51, %50 : vector<2x64xf32>
    %53 = arith.divf %51, %52 : vector<2x64xf32>
    %54 = vector.extract_strided_slice %42 {offsets = [0, 64], sizes = [2, 64], strides = [1, 1]} : vector<2x192xf32> to vector<2x64xf32>
    %55 = vector.extract_strided_slice %45 {offsets = [0, 64], sizes = [2, 64], strides = [1, 1]} : vector<2x192xf32> to vector<2x64xf32>
    %56 = arith.addf %54, %55 : vector<2x64xf32>
    %57 = arith.negf %56 : vector<2x64xf32>
    %58 = math.exp %57 : vector<2x64xf32>
    %cst_19 = arith.constant 1.000000e+00 : f32
    %59 = vector.broadcast %cst_19 : f32 to vector<2x64xf32>
    %60 = arith.addf %59, %58 : vector<2x64xf32>
    %61 = arith.divf %59, %60 : vector<2x64xf32>
    %62 = vector.extract_strided_slice %42 {offsets = [0, 128], sizes = [2, 64], strides = [1, 1]} : vector<2x192xf32> to vector<2x64xf32>
    %63 = vector.extract_strided_slice %45 {offsets = [0, 128], sizes = [2, 64], strides = [1, 1]} : vector<2x192xf32> to vector<2x64xf32>
    %64 = arith.mulf %53, %63 : vector<2x64xf32>
    %65 = arith.addf %62, %64 : vector<2x64xf32>
    %66 = math.tanh %65 : vector<2x64xf32>
    %cst_20 = arith.constant 1.000000e+00 : f32
    %67 = vector.broadcast %cst_20 : f32 to vector<2x64xf32>
    %68 = arith.subf %67, %61 : vector<2x64xf32>
    %69 = arith.mulf %68, %66 : vector<2x64xf32>
    %70 = arith.mulf %61, %38 : vector<2x64xf32>
    %71 = arith.addf %69, %70 : vector<2x64xf32>
    %c1 = arith.constant 1 : index
    %c0_21 = arith.constant 0 : index
    %c0_22 = arith.constant 0 : index
    %72 = vector.load %arg6[%c1, %c0_21, %c0_22] : memref<8x2x64xf32, #tpu.memory_space<vmem>>, vector<1x2x64xf32>
    %73 = vector.shape_cast %72 : vector<1x2x64xf32> to vector<2x64xf32>
    %74 = vector.shape_cast %71 : vector<2x64xf32> to vector<1x2x64xf32>
    tpu.vector_store %arg6[%c1, %c0_21, %c0_22], %74 {strides = array<i32>} : memref<8x2x64xf32, #tpu.memory_space<vmem>>, vector<1x2x64xf32>,
    %75 = vector.extract_strided_slice %7 {offsets = [4, 0], sizes = [2, 192], strides = [1, 1]} : vector<16x192xf32> to vector<2x192xf32>
    %cst_23 = arith.constant dense<0.000000e+00> : vector<2x192xf32>
    %76 = tpu.matmul %71, %1, %cst_23 {dimension_numbers = #tpu.dot_dimension_numbers<[1], [0], [0], [1], [0, 0, 1, 1], [], []>} : vector<2x64xf32>, vector<64x192xf32>, vector<2x192xf32> -> vector<2x192xf32>
    %77 = vector.broadcast %3 : vector<1x192xf32> to vector<2x192xf32>
    %78 = arith.addf %76, %77 : vector<2x192xf32>
    %79 = vector.extract_strided_slice %75 {offsets = [0, 0], sizes = [2, 64], strides = [1, 1]} : vector<2x192xf32> to vector<2x64xf32>
    %80 = vector.extract_strided_slice %78 {offsets = [0, 0], sizes = [2, 64], strides = [1, 1]} : vector<2x192xf32> to vector<2x64xf32>
    %81 = arith.addf %79, %80 : vector<2x64xf32>
    %82 = arith.negf %81 : vector<2x64xf32>
    %83 = math.exp %82 : vector<2x64xf32>
    %cst_24 = arith.constant 1.000000e+00 : f32
    %84 = vector.broadcast %cst_24 : f32 to vector<2x64xf32>
    %85 = arith.addf %84, %83 : vector<2x64xf32>
    %86 = arith.divf %84, %85 : vector<2x64xf32>
    %87 = vector.extract_strided_slice %75 {offsets = [0, 64], sizes = [2, 64], strides = [1, 1]} : vector<2x192xf32> to vector<2x64xf32>
    %88 = vector.extract_strided_slice %78 {offsets = [0, 64], sizes = [2, 64], strides = [1, 1]} : vector<2x192xf32> to vector<2x64xf32>
    %89 = arith.addf %87, %88 : vector<2x64xf32>
    %90 = arith.negf %89 : vector<2x64xf32>
    %91 = math.exp %90 : vector<2x64xf32>
    %cst_25 = arith.constant 1.000000e+00 : f32
    %92 = vector.broadcast %cst_25 : f32 to vector<2x64xf32>
    %93 = arith.addf %92, %91 : vector<2x64xf32>
    %94 = arith.divf %92, %93 : vector<2x64xf32>
    %95 = vector.extract_strided_slice %75 {offsets = [0, 128], sizes = [2, 64], strides = [1, 1]} : vector<2x192xf32> to vector<2x64xf32>
    %96 = vector.extract_strided_slice %78 {offsets = [0, 128], sizes = [2, 64], strides = [1, 1]} : vector<2x192xf32> to vector<2x64xf32>
    %97 = arith.mulf %86, %96 : vector<2x64xf32>
    %98 = arith.addf %95, %97 : vector<2x64xf32>
    %99 = math.tanh %98 : vector<2x64xf32>
    %cst_26 = arith.constant 1.000000e+00 : f32
    %100 = vector.broadcast %cst_26 : f32 to vector<2x64xf32>
    %101 = arith.subf %100, %94 : vector<2x64xf32>
    %102 = arith.mulf %101, %99 : vector<2x64xf32>
    %103 = arith.mulf %94, %71 : vector<2x64xf32>
    %104 = arith.addf %102, %103 : vector<2x64xf32>
    %c2 = arith.constant 2 : index
    %c0_27 = arith.constant 0 : index
    %c0_28 = arith.constant 0 : index
    %105 = vector.load %arg6[%c2, %c0_27, %c0_28] : memref<8x2x64xf32, #tpu.memory_space<vmem>>, vector<1x2x64xf32>
    %106 = vector.shape_cast %105 : vector<1x2x64xf32> to vector<2x64xf32>
    %107 = vector.shape_cast %104 : vector<2x64xf32> to vector<1x2x64xf32>
    tpu.vector_store %arg6[%c2, %c0_27, %c0_28], %107 {strides = array<i32>} : memref<8x2x64xf32, #tpu.memory_space<vmem>>, vector<1x2x64xf32>,
    %108 = vector.extract_strided_slice %7 {offsets = [6, 0], sizes = [2, 192], strides = [1, 1]} : vector<16x192xf32> to vector<2x192xf32>
    %cst_29 = arith.constant dense<0.000000e+00> : vector<2x192xf32>
    %109 = tpu.matmul %104, %1, %cst_29 {dimension_numbers = #tpu.dot_dimension_numbers<[1], [0], [0], [1], [0, 0, 1, 1], [], []>} : vector<2x64xf32>, vector<64x192xf32>, vector<2x192xf32> -> vector<2x192xf32>
    %110 = vector.broadcast %3 : vector<1x192xf32> to vector<2x192xf32>
    %111 = arith.addf %109, %110 : vector<2x192xf32>
    %112 = vector.extract_strided_slice %108 {offsets = [0, 0], sizes = [2, 64], strides = [1, 1]} : vector<2x192xf32> to vector<2x64xf32>
    %113 = vector.extract_strided_slice %111 {offsets = [0, 0], sizes = [2, 64], strides = [1, 1]} : vector<2x192xf32> to vector<2x64xf32>
    %114 = arith.addf %112, %113 : vector<2x64xf32>
    %115 = arith.negf %114 : vector<2x64xf32>
    %116 = math.exp %115 : vector<2x64xf32>
    %cst_30 = arith.constant 1.000000e+00 : f32
    %117 = vector.broadcast %cst_30 : f32 to vector<2x64xf32>
    %118 = arith.addf %117, %116 : vector<2x64xf32>
    %119 = arith.divf %117, %118 : vector<2x64xf32>
    %120 = vector.extract_strided_slice %108 {offsets = [0, 64], sizes = [2, 64], strides = [1, 1]} : vector<2x192xf32> to vector<2x64xf32>
    %121 = vector.extract_strided_slice %111 {offsets = [0, 64], sizes = [2, 64], strides = [1, 1]} : vector<2x192xf32> to vector<2x64xf32>
    %122 = arith.addf %120, %121 : vector<2x64xf32>
    %123 = arith.negf %122 : vector<2x64xf32>
    %124 = math.exp %123 : vector<2x64xf32>
    %cst_31 = arith.constant 1.000000e+00 : f32
    %125 = vector.broadcast %cst_31 : f32 to vector<2x64xf32>
    %126 = arith.addf %125, %124 : vector<2x64xf32>
    %127 = arith.divf %125, %126 : vector<2x64xf32>
    %128 = vector.extract_strided_slice %108 {offsets = [0, 128], sizes = [2, 64], strides = [1, 1]} : vector<2x192xf32> to vector<2x64xf32>
    %129 = vector.extract_strided_slice %111 {offsets = [0, 128], sizes = [2, 64], strides = [1, 1]} : vector<2x192xf32> to vector<2x64xf32>
    %130 = arith.mulf %119, %129 : vector<2x64xf32>
    %131 = arith.addf %128, %130 : vector<2x64xf32>
    %132 = math.tanh %131 : vector<2x64xf32>
    %cst_32 = arith.constant 1.000000e+00 : f32
    %133 = vector.broadcast %cst_32 : f32 to vector<2x64xf32>
    %134 = arith.subf %133, %127 : vector<2x64xf32>
    %135 = arith.mulf %134, %132 : vector<2x64xf32>
    %136 = arith.mulf %127, %104 : vector<2x64xf32>
    %137 = arith.addf %135, %136 : vector<2x64xf32>
    %c3 = arith.constant 3 : index
    %c0_33 = arith.constant 0 : index
    %c0_34 = arith.constant 0 : index
    %138 = vector.load %arg6[%c3, %c0_33, %c0_34] : memref<8x2x64xf32, #tpu.memory_space<vmem>>, vector<1x2x64xf32>
    %139 = vector.shape_cast %138 : vector<1x2x64xf32> to vector<2x64xf32>
    %140 = vector.shape_cast %137 : vector<2x64xf32> to vector<1x2x64xf32>
    tpu.vector_store %arg6[%c3, %c0_33, %c0_34], %140 {strides = array<i32>} : memref<8x2x64xf32, #tpu.memory_space<vmem>>, vector<1x2x64xf32>,
    %141 = vector.extract_strided_slice %7 {offsets = [8, 0], sizes = [2, 192], strides = [1, 1]} : vector<16x192xf32> to vector<2x192xf32>
    %cst_35 = arith.constant dense<0.000000e+00> : vector<2x192xf32>
    %142 = tpu.matmul %137, %1, %cst_35 {dimension_numbers = #tpu.dot_dimension_numbers<[1], [0], [0], [1], [0, 0, 1, 1], [], []>} : vector<2x64xf32>, vector<64x192xf32>, vector<2x192xf32> -> vector<2x192xf32>
    %143 = vector.broadcast %3 : vector<1x192xf32> to vector<2x192xf32>
    %144 = arith.addf %142, %143 : vector<2x192xf32>
    %145 = vector.extract_strided_slice %141 {offsets = [0, 0], sizes = [2, 64], strides = [1, 1]} : vector<2x192xf32> to vector<2x64xf32>
    %146 = vector.extract_strided_slice %144 {offsets = [0, 0], sizes = [2, 64], strides = [1, 1]} : vector<2x192xf32> to vector<2x64xf32>
    %147 = arith.addf %145, %146 : vector<2x64xf32>
    %148 = arith.negf %147 : vector<2x64xf32>
    %149 = math.exp %148 : vector<2x64xf32>
    %cst_36 = arith.constant 1.000000e+00 : f32
    %150 = vector.broadcast %cst_36 : f32 to vector<2x64xf32>
    %151 = arith.addf %150, %149 : vector<2x64xf32>
    %152 = arith.divf %150, %151 : vector<2x64xf32>
    %153 = vector.extract_strided_slice %141 {offsets = [0, 64], sizes = [2, 64], strides = [1, 1]} : vector<2x192xf32> to vector<2x64xf32>
    %154 = vector.extract_strided_slice %144 {offsets = [0, 64], sizes = [2, 64], strides = [1, 1]} : vector<2x192xf32> to vector<2x64xf32>
    %155 = arith.addf %153, %154 : vector<2x64xf32>
    %156 = arith.negf %155 : vector<2x64xf32>
    %157 = math.exp %156 : vector<2x64xf32>
    %cst_37 = arith.constant 1.000000e+00 : f32
    %158 = vector.broadcast %cst_37 : f32 to vector<2x64xf32>
    %159 = arith.addf %158, %157 : vector<2x64xf32>
    %160 = arith.divf %158, %159 : vector<2x64xf32>
    %161 = vector.extract_strided_slice %141 {offsets = [0, 128], sizes = [2, 64], strides = [1, 1]} : vector<2x192xf32> to vector<2x64xf32>
    %162 = vector.extract_strided_slice %144 {offsets = [0, 128], sizes = [2, 64], strides = [1, 1]} : vector<2x192xf32> to vector<2x64xf32>
    %163 = arith.mulf %152, %162 : vector<2x64xf32>
    %164 = arith.addf %161, %163 : vector<2x64xf32>
    %165 = math.tanh %164 : vector<2x64xf32>
    %cst_38 = arith.constant 1.000000e+00 : f32
    %166 = vector.broadcast %cst_38 : f32 to vector<2x64xf32>
    %167 = arith.subf %166, %160 : vector<2x64xf32>
    %168 = arith.mulf %167, %165 : vector<2x64xf32>
    %169 = arith.mulf %160, %137 : vector<2x64xf32>
    %170 = arith.addf %168, %169 : vector<2x64xf32>
    %c4 = arith.constant 4 : index
    %c0_39 = arith.constant 0 : index
    %c0_40 = arith.constant 0 : index
    %171 = vector.load %arg6[%c4, %c0_39, %c0_40] : memref<8x2x64xf32, #tpu.memory_space<vmem>>, vector<1x2x64xf32>
    %172 = vector.shape_cast %171 : vector<1x2x64xf32> to vector<2x64xf32>
    %173 = vector.shape_cast %170 : vector<2x64xf32> to vector<1x2x64xf32>
    tpu.vector_store %arg6[%c4, %c0_39, %c0_40], %173 {strides = array<i32>} : memref<8x2x64xf32, #tpu.memory_space<vmem>>, vector<1x2x64xf32>,
    %174 = vector.extract_strided_slice %7 {offsets = [10, 0], sizes = [2, 192], strides = [1, 1]} : vector<16x192xf32> to vector<2x192xf32>
    %cst_41 = arith.constant dense<0.000000e+00> : vector<2x192xf32>
    %175 = tpu.matmul %170, %1, %cst_41 {dimension_numbers = #tpu.dot_dimension_numbers<[1], [0], [0], [1], [0, 0, 1, 1], [], []>} : vector<2x64xf32>, vector<64x192xf32>, vector<2x192xf32> -> vector<2x192xf32>
    %176 = vector.broadcast %3 : vector<1x192xf32> to vector<2x192xf32>
    %177 = arith.addf %175, %176 : vector<2x192xf32>
    %178 = vector.extract_strided_slice %174 {offsets = [0, 0], sizes = [2, 64], strides = [1, 1]} : vector<2x192xf32> to vector<2x64xf32>
    %179 = vector.extract_strided_slice %177 {offsets = [0, 0], sizes = [2, 64], strides = [1, 1]} : vector<2x192xf32> to vector<2x64xf32>
    %180 = arith.addf %178, %179 : vector<2x64xf32>
    %181 = arith.negf %180 : vector<2x64xf32>
    %182 = math.exp %181 : vector<2x64xf32>
    %cst_42 = arith.constant 1.000000e+00 : f32
    %183 = vector.broadcast %cst_42 : f32 to vector<2x64xf32>
    %184 = arith.addf %183, %182 : vector<2x64xf32>
    %185 = arith.divf %183, %184 : vector<2x64xf32>
    %186 = vector.extract_strided_slice %174 {offsets = [0, 64], sizes = [2, 64], strides = [1, 1]} : vector<2x192xf32> to vector<2x64xf32>
    %187 = vector.extract_strided_slice %177 {offsets = [0, 64], sizes = [2, 64], strides = [1, 1]} : vector<2x192xf32> to vector<2x64xf32>
    %188 = arith.addf %186, %187 : vector<2x64xf32>
    %189 = arith.negf %188 : vector<2x64xf32>
    %190 = math.exp %189 : vector<2x64xf32>
    %cst_43 = arith.constant 1.000000e+00 : f32
    %191 = vector.broadcast %cst_43 : f32 to vector<2x64xf32>
    %192 = arith.addf %191, %190 : vector<2x64xf32>
    %193 = arith.divf %191, %192 : vector<2x64xf32>
    %194 = vector.extract_strided_slice %174 {offsets = [0, 128], sizes = [2, 64], strides = [1, 1]} : vector<2x192xf32> to vector<2x64xf32>
    %195 = vector.extract_strided_slice %177 {offsets = [0, 128], sizes = [2, 64], strides = [1, 1]} : vector<2x192xf32> to vector<2x64xf32>
    %196 = arith.mulf %185, %195 : vector<2x64xf32>
    %197 = arith.addf %194, %196 : vector<2x64xf32>
    %198 = math.tanh %197 : vector<2x64xf32>
    %cst_44 = arith.constant 1.000000e+00 : f32
    %199 = vector.broadcast %cst_44 : f32 to vector<2x64xf32>
    %200 = arith.subf %199, %193 : vector<2x64xf32>
    %201 = arith.mulf %200, %198 : vector<2x64xf32>
    %202 = arith.mulf %193, %170 : vector<2x64xf32>
    %203 = arith.addf %201, %202 : vector<2x64xf32>
    %c5 = arith.constant 5 : index
    %c0_45 = arith.constant 0 : index
    %c0_46 = arith.constant 0 : index
    %204 = vector.load %arg6[%c5, %c0_45, %c0_46] : memref<8x2x64xf32, #tpu.memory_space<vmem>>, vector<1x2x64xf32>
    %205 = vector.shape_cast %204 : vector<1x2x64xf32> to vector<2x64xf32>
    %206 = vector.shape_cast %203 : vector<2x64xf32> to vector<1x2x64xf32>
    tpu.vector_store %arg6[%c5, %c0_45, %c0_46], %206 {strides = array<i32>} : memref<8x2x64xf32, #tpu.memory_space<vmem>>, vector<1x2x64xf32>,
    %207 = vector.extract_strided_slice %7 {offsets = [12, 0], sizes = [2, 192], strides = [1, 1]} : vector<16x192xf32> to vector<2x192xf32>
    %cst_47 = arith.constant dense<0.000000e+00> : vector<2x192xf32>
    %208 = tpu.matmul %203, %1, %cst_47 {dimension_numbers = #tpu.dot_dimension_numbers<[1], [0], [0], [1], [0, 0, 1, 1], [], []>} : vector<2x64xf32>, vector<64x192xf32>, vector<2x192xf32> -> vector<2x192xf32>
    %209 = vector.broadcast %3 : vector<1x192xf32> to vector<2x192xf32>
    %210 = arith.addf %208, %209 : vector<2x192xf32>
    %211 = vector.extract_strided_slice %207 {offsets = [0, 0], sizes = [2, 64], strides = [1, 1]} : vector<2x192xf32> to vector<2x64xf32>
    %212 = vector.extract_strided_slice %210 {offsets = [0, 0], sizes = [2, 64], strides = [1, 1]} : vector<2x192xf32> to vector<2x64xf32>
    %213 = arith.addf %211, %212 : vector<2x64xf32>
    %214 = arith.negf %213 : vector<2x64xf32>
    %215 = math.exp %214 : vector<2x64xf32>
    %cst_48 = arith.constant 1.000000e+00 : f32
    %216 = vector.broadcast %cst_48 : f32 to vector<2x64xf32>
    %217 = arith.addf %216, %215 : vector<2x64xf32>
    %218 = arith.divf %216, %217 : vector<2x64xf32>
    %219 = vector.extract_strided_slice %207 {offsets = [0, 64], sizes = [2, 64], strides = [1, 1]} : vector<2x192xf32> to vector<2x64xf32>
    %220 = vector.extract_strided_slice %210 {offsets = [0, 64], sizes = [2, 64], strides = [1, 1]} : vector<2x192xf32> to vector<2x64xf32>
    %221 = arith.addf %219, %220 : vector<2x64xf32>
    %222 = arith.negf %221 : vector<2x64xf32>
    %223 = math.exp %222 : vector<2x64xf32>
    %cst_49 = arith.constant 1.000000e+00 : f32
    %224 = vector.broadcast %cst_49 : f32 to vector<2x64xf32>
    %225 = arith.addf %224, %223 : vector<2x64xf32>
    %226 = arith.divf %224, %225 : vector<2x64xf32>
    %227 = vector.extract_strided_slice %207 {offsets = [0, 128], sizes = [2, 64], strides = [1, 1]} : vector<2x192xf32> to vector<2x64xf32>
    %228 = vector.extract_strided_slice %210 {offsets = [0, 128], sizes = [2, 64], strides = [1, 1]} : vector<2x192xf32> to vector<2x64xf32>
    %229 = arith.mulf %218, %228 : vector<2x64xf32>
    %230 = arith.addf %227, %229 : vector<2x64xf32>
    %231 = math.tanh %230 : vector<2x64xf32>
    %cst_50 = arith.constant 1.000000e+00 : f32
    %232 = vector.broadcast %cst_50 : f32 to vector<2x64xf32>
    %233 = arith.subf %232, %226 : vector<2x64xf32>
    %234 = arith.mulf %233, %231 : vector<2x64xf32>
    %235 = arith.mulf %226, %203 : vector<2x64xf32>
    %236 = arith.addf %234, %235 : vector<2x64xf32>
    %c6 = arith.constant 6 : index
    %c0_51 = arith.constant 0 : index
    %c0_52 = arith.constant 0 : index
    %237 = vector.load %arg6[%c6, %c0_51, %c0_52] : memref<8x2x64xf32, #tpu.memory_space<vmem>>, vector<1x2x64xf32>
    %238 = vector.shape_cast %237 : vector<1x2x64xf32> to vector<2x64xf32>
    %239 = vector.shape_cast %236 : vector<2x64xf32> to vector<1x2x64xf32>
    tpu.vector_store %arg6[%c6, %c0_51, %c0_52], %239 {strides = array<i32>} : memref<8x2x64xf32, #tpu.memory_space<vmem>>, vector<1x2x64xf32>,
    %240 = vector.extract_strided_slice %7 {offsets = [14, 0], sizes = [2, 192], strides = [1, 1]} : vector<16x192xf32> to vector<2x192xf32>
    %cst_53 = arith.constant dense<0.000000e+00> : vector<2x192xf32>
    %241 = tpu.matmul %236, %1, %cst_53 {dimension_numbers = #tpu.dot_dimension_numbers<[1], [0], [0], [1], [0, 0, 1, 1], [], []>} : vector<2x64xf32>, vector<64x192xf32>, vector<2x192xf32> -> vector<2x192xf32>
    %242 = vector.broadcast %3 : vector<1x192xf32> to vector<2x192xf32>
    %243 = arith.addf %241, %242 : vector<2x192xf32>
    %244 = vector.extract_strided_slice %240 {offsets = [0, 0], sizes = [2, 64], strides = [1, 1]} : vector<2x192xf32> to vector<2x64xf32>
    %245 = vector.extract_strided_slice %243 {offsets = [0, 0], sizes = [2, 64], strides = [1, 1]} : vector<2x192xf32> to vector<2x64xf32>
    %246 = arith.addf %244, %245 : vector<2x64xf32>
    %247 = arith.negf %246 : vector<2x64xf32>
    %248 = math.exp %247 : vector<2x64xf32>
    %cst_54 = arith.constant 1.000000e+00 : f32
    %249 = vector.broadcast %cst_54 : f32 to vector<2x64xf32>
    %250 = arith.addf %249, %248 : vector<2x64xf32>
    %251 = arith.divf %249, %250 : vector<2x64xf32>
    %252 = vector.extract_strided_slice %240 {offsets = [0, 64], sizes = [2, 64], strides = [1, 1]} : vector<2x192xf32> to vector<2x64xf32>
    %253 = vector.extract_strided_slice %243 {offsets = [0, 64], sizes = [2, 64], strides = [1, 1]} : vector<2x192xf32> to vector<2x64xf32>
    %254 = arith.addf %252, %253 : vector<2x64xf32>
    %255 = arith.negf %254 : vector<2x64xf32>
    %256 = math.exp %255 : vector<2x64xf32>
    %cst_55 = arith.constant 1.000000e+00 : f32
    %257 = vector.broadcast %cst_55 : f32 to vector<2x64xf32>
    %258 = arith.addf %257, %256 : vector<2x64xf32>
    %259 = arith.divf %257, %258 : vector<2x64xf32>
    %260 = vector.extract_strided_slice %240 {offsets = [0, 128], sizes = [2, 64], strides = [1, 1]} : vector<2x192xf32> to vector<2x64xf32>
    %261 = vector.extract_strided_slice %243 {offsets = [0, 128], sizes = [2, 64], strides = [1, 1]} : vector<2x192xf32> to vector<2x64xf32>
    %262 = arith.mulf %251, %261 : vector<2x64xf32>
    %263 = arith.addf %260, %262 : vector<2x64xf32>
    %264 = math.tanh %263 : vector<2x64xf32>
    %cst_56 = arith.constant 1.000000e+00 : f32
    %265 = vector.broadcast %cst_56 : f32 to vector<2x64xf32>
    %266 = arith.subf %265, %259 : vector<2x64xf32>
    %267 = arith.mulf %266, %264 : vector<2x64xf32>
    %268 = arith.mulf %259, %236 : vector<2x64xf32>
    %269 = arith.addf %267, %268 : vector<2x64xf32>
    %c7 = arith.constant 7 : index
    %c0_57 = arith.constant 0 : index
    %c0_58 = arith.constant 0 : index
    %270 = vector.load %arg6[%c7, %c0_57, %c0_58] : memref<8x2x64xf32, #tpu.memory_space<vmem>>, vector<1x2x64xf32>
    %271 = vector.shape_cast %270 : vector<1x2x64xf32> to vector<2x64xf32>
    %272 = vector.shape_cast %269 : vector<2x64xf32> to vector<1x2x64xf32>
    tpu.vector_store %arg6[%c7, %c0_57, %c0_58], %272 {strides = array<i32>} : memref<8x2x64xf32, #tpu.memory_space<vmem>>, vector<1x2x64xf32>,
    %c0_59 = arith.constant 0 : index
    %c0_60 = arith.constant 0 : index
    %c0_61 = arith.constant 0 : index
    %273 = vector.load %arg7[%c0_59, %c0_60, %c0_61] : memref<1x2x64xf32, #tpu.memory_space<vmem>>, vector<1x2x64xf32>
    %274 = vector.shape_cast %273 : vector<1x2x64xf32> to vector<2x64xf32>
    %275 = vector.shape_cast %269 : vector<2x64xf32> to vector<1x2x64xf32>
    tpu.vector_store %arg7[%c0_59, %c0_60, %c0_61], %275 {strides = array<i32>} : memref<1x2x64xf32, #tpu.memory_space<vmem>>, vector<1x2x64xf32>,
    return
  }
  func.func @transform_0(%arg0: i32) -> (i32, i32) {
    %c0_i32 = arith.constant 0 : i32
    %c0_i32_0 = arith.constant 0 : i32
    %c0_i32_1 = arith.constant 0 : i32
    return %c0_i32, %c0_i32_0 : i32, i32
  }
  func.func @transform_1(%arg0: i32) -> (i32, i32) {
    %c0_i32 = arith.constant 0 : i32
    %c0_i32_0 = arith.constant 0 : i32
    %c0_i32_1 = arith.constant 0 : i32
    return %c0_i32, %c0_i32_0 : i32, i32
  }
  func.func @transform_2(%arg0: i32) -> (i32, i32) {
    %c0_i32 = arith.constant 0 : i32
    %c0_i32_0 = arith.constant 0 : i32
    %c0_i32_1 = arith.constant 0 : i32
    return %c0_i32, %c0_i32_0 : i32, i32
  }
  func.func @transform_3(%arg0: i32) -> (i32, i32) {
    %c0_i32 = arith.constant 0 : i32
    %c0_i32_0 = arith.constant 0 : i32
    %c0_i32_1 = arith.constant 0 : i32
    return %c0_i32, %c0_i32_0 : i32, i32
  }
  func.func @transform_4(%arg0: i32) -> (i32, i32) {
    %c0_i32 = arith.constant 0 : i32
    %c0_i32_0 = arith.constant 0 : i32
    %c0_i32_1 = arith.constant 0 : i32
    return %c0_i32, %c0_i32_0 : i32, i32
  }
  func.func @transform_5(%arg0: i32) -> (i32, i32, i32) {
    %c0_i32 = arith.constant 0 : i32
    %c0_i32_0 = arith.constant 0 : i32
    %c0_i32_1 = arith.constant 0 : i32
    %c0_i32_2 = arith.constant 0 : i32
    return %c0_i32, %c0_i32_0, %c0_i32_1 : i32, i32, i32
  }
  func.func @transform_6(%arg0: i32) -> (i32, i32, i32) {
    %c0_i32 = arith.constant 0 : i32
    %c0_i32_0 = arith.constant 0 : i32
    %c0_i32_1 = arith.constant 0 : i32
    %c0_i32_2 = arith.constant 0 : i32
    return %c0_i32, %c0_i32_0, %c0_i32_1 : i32, i32, i32
  }
}

</mosaic_0001>

<bundles_post_ra>
// kernel: encoder_forward.1
= control target key start
LH: loop header
LB: loop body
LE: loop exit
PB: predicated region body
PF: predicated region fallthrough
CT: control target
= control target key end

     0   :  { %12 = vsyncpa [#allocation3], 0  ;;  %v1289_v7 = vmov 0.0   ;;  %s1652_s0 = inlined_call_operand.vmem [shape: f32[16,32], index: 0, kind: input, shape index: {}]   ;;  %s1653_s1 = inlined_call_operand.vmem [shape: f32[32,192], index: 1, kind: input, shape index: {}]   ;;  %s1654_s2 = inlined_call_operand.vmem [shape: f32[64,192], index: 2, kind: input, shape index: {}]   ;;  %s1655_s3 = inlined_call_operand.vmem [shape: f32[1,192], index: 3, kind: input, shape index: {}]   ;;  %s1656_s4 = inlined_call_operand.vmem [shape: f32[1,192], index: 4, kind: input, shape index: {}]   ;;  %s1657_s5 = inlined_call_operand.hbm [shape: f32[8,2,64], index: 5, kind: output, shape index: {0}]   ;;  %s1658_s6 = inlined_call_operand.hbm [shape: f32[1,2,64], index: 6, kind: output, shape index: {1}]  }
   0x1   :  { %v33_v0 = vld [vmem:[%s1654_s2 + $0x8] sm:$0xff]  ;;  %v35_v1 = vld [vmem:[%s1654_s2 + $0x18] sm:$0xff]  ;;  %v32_v2 = vld [vmem:[%s1654_s2] sm:$0xff]  ;;  %134 = vmatprep.mubr.f32.mxu0 %v1289_v7  ;;  %226 = vmatprep.mubr.f32.mxu1 %v1289_v7 }
   0x2   :  { %v1339_v3 = vpack.c.bf16 %v35_v1, %v33_v0  ;;  %v34_v4 = vld [vmem:[%s1654_s2 + $0x10] sm:$0xff]  ;;  %v37_v5 = vld [vmem:[%s1654_s2 + $0x28] sm:$0xff]  ;;  %v39_v6 = vld [vmem:[%s1654_s2 + $0x38] sm:$0xff] }
   0x3   :  { %v1352_v8 = vpack.c.bf16 %v34_v4, %v32_v2  ;;  %v1354_v9 = vpack.c.bf16 %v39_v6, %v37_v5  ;;  %v36_v10 = vld [vmem:[%s1654_s2 + $0x20] sm:$0xff]  ;;  %v38_v11 = vld [vmem:[%s1654_s2 + $0x30] sm:$0xff]  ;;  %v25_v12 = vld [vmem:[%s1653_s1 + $0x8] sm:$0xff] }
   0x4   :  { %1060 = vmatprep.subr.bf16.mxu1 %v1339_v3  ;;  %v27_v13 = vld [vmem:[%s1653_s1 + $0x18] sm:$0xff]  ;;  %v24_v14 = vld [vmem:[%s1653_s1] sm:$0xff]  ;;  %v26_v15 = vld [vmem:[%s1653_s1 + $0x10] sm:$0xff]  ;;  %v1376_v16 = vpack.c.bf16 %v38_v11, %v36_v10 }
   0x5   :  { %1062 = vmatpush1.bf16.msra.mxu1 %v1352_v8  ;;  %v1051_v17 = vpack.c.bf16 %v27_v13, %v25_v12  ;;  %v1053_v18 = vpack.c.bf16 %v26_v15, %v24_v14  ;;  %v41_v19 = vld [vmem:[%s1654_s2 + $0x48] sm:$0xff]  ;;  %v43_v20 = vld [vmem:[%s1654_s2 + $0x58] sm:$0xff]  ;;  %v40_v21 = vld [vmem:[%s1654_s2 + $0x40] sm:$0xff] }
   0x6   :  { %1064 = vmatprep.subr.bf16.mxu1 %v1354_v9  ;;  %v1388_v22 = vpack.c.bf16 %v43_v20, %v41_v19  ;;  %v42_v23 = vld [vmem:[%s1654_s2 + $0x50] sm:$0xff]  ;;  %v29_v24 = vld [vmem:[%s1653_s1 + $0x28] sm:$0xff]  ;;  %v31_v25 = vld [vmem:[%s1653_s1 + $0x38] sm:$0xff] }
   0x7   :  { %1052 = vmatprep.subr.bf16.mxu0 %v1051_v17  ;;  %v1055_v26 = vpack.c.bf16 %v31_v25, %v29_v24  ;;  %v28_v27 = vld [vmem:[%s1653_s1 + $0x20] sm:$0xff]  ;;  %v30_v28 = vld [vmem:[%s1653_s1 + $0x30] sm:$0xff]  ;;  %v45_v29 = vld [vmem:[%s1654_s2 + $0x68] sm:$0xff]  ;;  %v1412_v32 = vpack.c.bf16 %v42_v23, %v40_v21 }
   0x8   :  { %1054 = vmatpush1.bf16.msra.mxu0 %v1053_v18  ;;  %v1057_v30 = vpack.c.bf16 %v30_v28, %v28_v27  ;;  %v47_v31 = vld [vmem:[%s1654_s2 + $0x78] sm:$0xff]  ;;  %v44_v34 = vld [vmem:[%s1654_s2 + $0x60] sm:$0xff]  ;;  %v46_v35 = vld [vmem:[%s1654_s2 + $0x70] sm:$0xff] }
   0x9   :  { %1066 = vmatpush1.bf16.msra.mxu1 %v1376_v16  ;;  %1056 = vmatprep.subr.bf16.mxu0 %v1055_v26  ;;  %v1415_v33 = vpack.c.bf16 %v47_v31, %v45_v29 }
   0xa   :  { %1068 = vmatprep.subr.bf16.mxu1 %v1388_v22 }
   0xb   :  { %13 = vsyncpa [#allocation5], 0  ;;  %v50_v36 = vld [vmem:[%s1652_s0] sm:$0xff]  ;;  %vm63_vm0 = vcmask 261120   ;;  %v1427_v37 = vpack.c.bf16 %v46_v35, %v44_v34  ;;  %v53_v38 = vlaneseq  ;;  %v51_v63 = vld [vmem:[%s1652_s0 + $0x8] sm:$0xff]  ;;  %s1290_s25 = smov 64  }
   0xc   :  { %1058 = vmatpush1.bf16.msra.mxu0 %v1057_v30  ;;  %v48_v41 = vld [vmem:[%s1655_s3] sm:$0x3]  ;;  %vm255_vm1 = vcmask 517120   ;;  %vm158_vm2 = vcmask 523264   ;;  %vm361_vm3 = vcmask 519170   ;;  %vm579_vm4 = vcmask 523270  }
   0xd   :  { %1070 = vmatpush1.bf16.msra.mxu1 %v1412_v32  ;;  %1076 = vmatprep.subr.bf16.mxu0 %v1339_v3  ;;  %v54_v39 = vshrl.u32 %v53_v38, 7  ;;  %v49_v42 = vld [vmem:[%s1656_s4] sm:$0x3]  ;;  %vm470_vm5 = vcmask 521220   ;;  %s1291_s0 = smov [#allocation2]   ;;  %s1292_s27 = smov [#allocation4]  }
   0xe   :  { %1072 = vmatprep.subr.bf16.mxu1 %v1415_v33  ;;  %s1009_s26 = sshll.u32 %s1291_s0, 4  ;;  %s1022_s28 = sshll.u32 %s1292_s27, 4  ;;  %s1010_s26 = int_to_ptr.vmem [resolvable:$true] %s1009_s26  ;;  %s1619_s28 = int_to_ptr.vmem [resolvable:$true] %s1022_s28 }
   0xf   :  { %1034 = vmatmul.mubr.msk.f32.vlgmr.msra.gmra.mrb[0].mxu0 %vm63_vm0, %v50_v36  ;;  %v55_v40 = vsub.s32 0, %v54_v39  ;;  %v59_v55 = vsub.s32 1, %v54_v39  ;;  %s1241_s29 = scalar_lea.vmem %s1010_s26, 256  ;;  %p1246_p1 = scmp.lt.s32.totalorder %s1010_s26, %s1010_s26 }
  0x10   :  { %1078 = vmatpush1.bf16.msra.mxu0 %v1352_v8  ;;  %140 = vmatprep.mubr.f32.mxu0 %v1289_v7  ;;  %p1242_p0 = scmp.ne.s32.totalorder %s1010_s26, %s1241_s29  ;;  %p1247_p2 = scmp.lt.s32.totalorder %s1241_s29, %s1241_s29 }
  0x11   :  { %1074 = vmatpush1.bf16.msra.mxu1 %v1427_v37  ;;  %1080 = vmatprep.subr.bf16.mxu0 %v1354_v9  ;;  %v1459_v43 = vrot.slane %v48_v41, %v55_v40  ;;  %v1461_v46 = vrot.slane %v49_v42, %v55_v40  ;;  %v1468_v56 = vrot.slane %v49_v42, %v59_v55 }
  0x12   :  { %1092 = vmatprep.subr.bf16.mxu1 %v1339_v3  ;;  %v1470_v57 = vrot.slane %v48_v41, %v59_v55  ;;  %p1248_p3 = por %p1247_p2, %p1246_p1 }
  0x13   :  { %1035 = vmatmul.mubr.msk.f32.gmra.mrb[2].mxu0 %vm63_vm0, %v51_v63 }
  0x14   :  { %227 = vmatmul.mubr.f32.vlgmr.msra.gmra.mrb[0].mxu1 %v1289_v7  ;;  %1082 = vmatpush1.bf16.msra.mxu0 %v1376_v16  ;;  %p1249_p4 = pnand %p1248_p3, %p1242_p0 }
  0x15   :  { %1084 = vmatprep.subr.bf16.mxu0 %v1388_v22  ;;  %1094 = vmatpush1.bf16.msra.mxu1 %v1352_v8 }
  0x16   :  { %1096 = vmatprep.subr.bf16.mxu1 %v1354_v9  ;;  %432 = vmatprep.mubr.f32.mxu1 %v1289_v7 }
  0x17   :  { %323 = vmatprep.mubr.f32.mxu0 %v1289_v7 }
  0x18   :  { %1086 = vmatpush1.bf16.msra.mxu0 %v1412_v32 }
  0x19   :  { %1088 = vmatprep.subr.bf16.mxu0 %v1415_v33  ;;  %1098 = vmatpush1.bf16.msra.mxu1 %v1376_v16 }
  0x1a   :  { %1100 = vmatprep.subr.bf16.mxu1 %v1388_v22 }
  0x1c   :  { %1090 = vmatpush1.bf16.msra.mxu0 %v1427_v37 }
  0x1d   :  { %1102 = vmatpush1.bf16.msra.mxu1 %v1412_v32  ;;  %1108 = vmatprep.subr.bf16.mxu0 %v1339_v3 }
  0x1e   :  { %1104 = vmatprep.subr.bf16.mxu1 %v1415_v33 }
  0x21   :  { %1106 = vmatpush1.bf16.msra.mxu1 %v1427_v37 }
  0x22   :  { %1124 = vmatprep.subr.bf16.mxu1 %v1339_v3 }
  0xe2   :  { %v136_v44 = vpop.f32.mrb[0].mxu0 }
  0xe3   :  { %v138_v45 = vpop.f32.mrb[1].mxu0  ;;  %v1464_v47 = vadd.f32 %v136_v44, %v1459_v43 }
  0xe4   :  { %v1474_v60 = vadd.f32 %v138_v45, %v1470_v57 }
  0xe6   :  { %v1484_v10 = vpop.f32.mrb[2].mxu0 }
  0xe7   :  { %v228_v48 = vpop.f32.mrb[0].mxu1  ;;  %v1486_v11 = vpop.f32.mrb[3].mxu0 }
  0xe8   :  { %v229_v49 = vadd.f32 %v228_v48, %v1461_v46  ;;  %v230_v50 = vpop.f32.mrb[1].mxu1 }
  0xe9   :  { %v231_v58 = vadd.f32 %v230_v50, %v1468_v56 }
  0xea   :  { %v233_v51 = vadd.f32 %v229_v49, %v1464_v47 }
  0xec   :  { %v1036_v52 = vmul.f32 -1.442695, %v233_v51 }
  0xee   :  { %1193 = vpow2.f32 %v1036_v52 }
  0xf8   :  { %v1194_v53 = vpop.eup %1193 }
  0xf9   :  { %v237_v54 = vadd.f32 1.0, %v1194_v53 }
  0xfb   :  { %1195 = vrcp.f32 %v237_v54 }
 0x105   :  { %v1196_v59 = vpop.eup %1195 }
 0x106   :  { %v240_v61 = vmul.f32 %v1196_v59, %v231_v58  ;;  %v243_v1 = vsub.f32 1.0, %v1196_v59  ;;  %v249_v4 = vmul.f32 0.0, %v1196_v59 }
 0x108   :  { %v241_v62 = vadd.f32 %v240_v61, %v1474_v60 }
 0x10a   :  { %1197 = vtanh.f32 %v241_v62 }
 0x114   :  { %v1198_v0 = vpop.eup %1197 }
 0x115   :  { %245 = vrot.lane.b32.xlu0 %v1198_v0, %s1290_s25 }
 0x187   :  { %v246_v2 = vpop.permute.xlu0 %245 }
 0x188   :  { %v248_v5 = vmul.f32 %v246_v2, %v243_v1 }
 0x18a   :  { %v250_v6 = vadd.f32 %v249_v4, %v248_v5 }
 0x18c   :  { %252 = vrot.lane.b32.xlu0 %v250_v6, %s1290_s25  ;;  %v352_v24 = vrot.slane %v250_v6, 6 }
 0x1fe   :  { %v253_v12 = vpop.permute.xlu0 %252 }
 0x1ff   :  { %256 = vst.msk [vmem:[#allocation2] sm:$0x3] %vm255_vm1, %v253_v12  ;;  %1037 = vmatmul.mubr.msk.f32.vlgmr.msra.gmra.mrb[4].mxu0 %vm158_vm2, %v253_v12 }
 0x200   :  { %1110 = vmatpush1.bf16.msra.mxu0 %v1352_v8  ;;  %541 = vmatprep.mubr.f32.mxu0 %v1289_v7 }
 0x201   :  { %1112 = vmatprep.subr.bf16.mxu0 %v1354_v9 }
 0x204   :  { %1114 = vmatpush1.bf16.msra.mxu0 %v1376_v16 }
 0x205   :  { %1116 = vmatprep.subr.bf16.mxu0 %v1388_v22 }
 0x208   :  { %1118 = vmatpush1.bf16.msra.mxu0 %v1412_v32 }
 0x209   :  { %1120 = vmatprep.subr.bf16.mxu0 %v1415_v33 }
 0x20c   :  { %1122 = vmatpush1.bf16.msra.mxu0 %v1427_v37 }
 0x20d   :  { %1140 = vmatprep.subr.bf16.mxu0 %v1339_v3 }
 0x2d2   :  { %v325_v13 = vpop.f32.mrb[4].mxu0 }
 0x2d3   :  { %v326_v14 = vadd.f32 %v325_v13, %v1461_v46  ;;  %v327_v15 = vpop.f32.mrb[5].mxu0 }
 0x2d4   :  { %v328_v23 = vadd.f32 %v327_v15, %v1468_v56 }
 0x2d5   :  { %v331_v17 = vrot.slane %v326_v14, 6 }
 0x2d6   :  { %v341_v25 = vrot.slane %v328_v23, 6 }
 0x2d7   :  { %v333_v18 = vadd.f32 %v331_v17, %v1464_v47 }
 0x2d9   :  { %v1038_v19 = vmul.f32 -1.442695, %v333_v18 }
 0x2db   :  { %1199 = vpow2.f32 %v1038_v19 }
 0x2e5   :  { %v1200_v20 = vpop.eup %1199 }
 0x2e6   :  { %v337_v21 = vadd.f32 1.0, %v1200_v20 }
 0x2e8   :  { %1201 = vrcp.f32 %v337_v21 }
 0x2f2   :  { %v1202_v26 = vpop.eup %1201 }
 0x2f3   :  { %v343_v27 = vmul.f32 %v1202_v26, %v341_v25  ;;  %v354_v28 = vmul.f32 %v1202_v26, %v352_v24  ;;  %v346_v31 = vsub.f32 1.0, %v1202_v26 }
 0x2f5   :  { %v344_v29 = vadd.f32 %v343_v27, %v1474_v60 }
 0x2f7   :  { %1203 = vtanh.f32 %v344_v29 }
 0x301   :  { %v1204_v30 = vpop.eup %1203 }
 0x302   :  { %348 = vrot.lane.b32.xlu1 %v1204_v30, %s1290_s25 }
 0x374   :  { %v349_v34 = vpop.permute.xlu1 %348 }
 0x375   :  { %v351_v35 = vmul.f32 %v349_v34, %v346_v31  ;;  %v1559_v34 = vadd.f32 %v1484_v10, %v1459_v43 }
 0x377   :  { %v1504_v36 = vadd.f32 %v354_v28, %v351_v35 }
 0x379   :  { %v363_v38 = vrot.slane %v1504_v36, 2  ;;  %v461_v61 = vrot.slane %v1504_v36, 6 }
 0x37b   :  { %364 = vrot.lane.b32.xlu1 %v363_v38, %s1290_s25 }
 0x3ed   :  { %v365_v39 = vpop.permute.xlu1 %364 }
 0x3ee   :  { %1039 = vmatmul.mubr.msk.f32.vlgmr.msra.gmra.mrb[2].mxu1 %vm158_vm2, %v365_v39 }
 0x3ef   :  { %1126 = vmatpush1.bf16.msra.mxu1 %v1352_v8  ;;  %650 = vmatprep.mubr.f32.mxu1 %v1289_v7 }
 0x3f0   :  { %1128 = vmatprep.subr.bf16.mxu1 %v1354_v9 }
 0x3f3   :  { %1130 = vmatpush1.bf16.msra.mxu1 %v1376_v16 }
 0x3f4   :  { %1132 = vmatprep.subr.bf16.mxu1 %v1388_v22 }
 0x3f7   :  { %1134 = vmatpush1.bf16.msra.mxu1 %v1412_v32 }
 0x3f8   :  { %1136 = vmatprep.subr.bf16.mxu1 %v1415_v33 }
 0x3fb   :  { %1138 = vmatpush1.bf16.msra.mxu1 %v1427_v37 }
 0x3fc   :  { %1156 = vmatprep.subr.bf16.mxu1 %v1339_v3 }
 0x4c1   :  { %v434_v40 = vpop.f32.mrb[2].mxu1 }
 0x4c2   :  { %v435_v41 = vadd.f32 %v434_v40, %v1461_v46  ;;  %v436_v42 = vpop.f32.mrb[3].mxu1 }
 0x4c3   :  { %v437_v51 = vadd.f32 %v436_v42, %v1468_v56 }
 0x4c4   :  { %v440_v44 = vrot.slane %v435_v41, 4 }
 0x4c5   :  { %v450_v52 = vrot.slane %v437_v51, 4 }
 0x4c6   :  { %v442_v45 = vadd.f32 %v440_v44, %v1464_v47 }
 0x4c8   :  { %v1040_v48 = vmul.f32 -1.442695, %v442_v45 }
 0x4ca   :  { %1205 = vpow2.f32 %v1040_v48  ;;  %v1566_v48 = vadd.f32 %v1486_v11, %v1470_v57 }
 0x4d4   :  { %v1206_v49 = vpop.eup %1205 }
 0x4d5   :  { %v446_v50 = vadd.f32 1.0, %v1206_v49 }
 0x4d7   :  { %1207 = vrcp.f32 %v446_v50 }
 0x4e1   :  { %v1208_v53 = vpop.eup %1207 }
 0x4e2   :  { %v452_v54 = vmul.f32 %v1208_v53, %v450_v52  ;;  %v455_v59 = vsub.f32 1.0, %v1208_v53  ;;  %v463_v63 = vmul.f32 %v1208_v53, %v461_v61 }
 0x4e4   :  { %v453_v55 = vadd.f32 %v452_v54, %v1474_v60 }
 0x4e6   :  { %1209 = vtanh.f32 %v453_v55 }
 0x4f0   :  { %v1210_v58 = vpop.eup %1209 }
 0x4f1   :  { %457 = vrot.lane.b32.xlu0 %v1210_v58, %s1290_s25 }
 0x563   :  { %v458_v62 = vpop.permute.xlu0 %457 }
 0x564   :  { %v460_v0 = vmul.f32 %v458_v62, %v455_v59 }
 0x566   :  { %v1524_v1 = vadd.f32 %v463_v63, %v460_v0 }
 0x568   :  { %v472_v2 = vrot.slane %v1524_v1, 4  ;;  %v570_v26 = vrot.slane %v1524_v1, 6 }
 0x56a   :  { %473 = vrot.lane.b32.xlu1 %v472_v2, %s1290_s25 }
 0x5dc   :  { %v474_v4 = vpop.permute.xlu1 %473 }
 0x5dd   :  { %1041 = vmatmul.mubr.msk.f32.vlgmr.msra.gmra.mrb[6].mxu0 %vm158_vm2, %v474_v4 }
 0x5de   :  { %1142 = vmatpush1.bf16.msra.mxu0 %v1352_v8  ;;  %748 = vmatprep.mubr.f32.mxu0 %v1289_v7 }
 0x5df   :  { %1144 = vmatprep.subr.bf16.mxu0 %v1354_v9 }
 0x5e2   :  { %1146 = vmatpush1.bf16.msra.mxu0 %v1376_v16 }
 0x5e3   :  { %1148 = vmatprep.subr.bf16.mxu0 %v1388_v22 }
 0x5e6   :  { %1150 = vmatpush1.bf16.msra.mxu0 %v1412_v32 }
 0x5e7   :  { %1152 = vmatprep.subr.bf16.mxu0 %v1415_v33 }
 0x5ea   :  { %1154 = vmatpush1.bf16.msra.mxu0 %v1427_v37 }
 0x5eb   :  { %1172 = vmatprep.subr.bf16.mxu0 %v1339_v3 }
 0x6b0   :  { %v543_v5 = vpop.f32.mrb[6].mxu0 }
 0x6b1   :  { %v544_v6 = vadd.f32 %v543_v5, %v1461_v46  ;;  %v545_v12 = vpop.f32.mrb[7].mxu0 }
 0x6b2   :  { %v546_v19 = vadd.f32 %v545_v12, %v1468_v56 }
 0x6b3   :  { %v549_v13 = vrot.slane %v544_v6, 2 }
 0x6b4   :  { %v559_v20 = vrot.slane %v546_v19, 2 }
 0x6b5   :  { %v551_v14 = vadd.f32 %v549_v13, %v1464_v47 }
 0x6b7   :  { %v1042_v15 = vmul.f32 -1.442695, %v551_v14 }
 0x6b9   :  { %1211 = vpow2.f32 %v1042_v15 }
 0x6c3   :  { %v1212_v17 = vpop.eup %1211 }
 0x6c4   :  { %v555_v18 = vadd.f32 1.0, %v1212_v17 }
 0x6c6   :  { %1213 = vrcp.f32 %v555_v18 }
 0x6d0   :  { %v1214_v21 = vpop.eup %1213 }
 0x6d1   :  { %v561_v23 = vmul.f32 %v1214_v21, %v559_v20  ;;  %v564_v25 = vsub.f32 1.0, %v1214_v21  ;;  %v572_v27 = vmul.f32 %v1214_v21, %v570_v26 }
 0x6d3   :  { %v562_v24 = vadd.f32 %v561_v23, %v1474_v60 }
 0x6d5   :  { %1215 = vtanh.f32 %v562_v24 }
 0x6df   :  { %v1216_v3 = vpop.eup %1215 }
 0x6e0   :  { %566 = vrot.lane.b32.xlu0 %v1216_v3, %s1290_s25 }
 0x752   :  { %v567_v47 = vpop.permute.xlu0 %566 }
 0x753   :  { %v569_v28 = vmul.f32 %v567_v47, %v564_v25 }
 0x755   :  { %v1544_v29 = vadd.f32 %v572_v27, %v569_v28 }
 0x757   :  { %v581_v30 = vrot.slane %v1544_v29, 6 }
 0x759   :  { %582 = vrot.lane.b32.xlu1 %v581_v30, %s1290_s25 }
 0x7cb   :  { %v583_v31 = vpop.permute.xlu1 %582 }
 0x7cc   :  { %1043 = vmatmul.mubr.msk.f32.vlgmr.msra.gmra.mrb[4].mxu1 %vm158_vm2, %v583_v31 }
 0x7cd   :  { %1158 = vmatpush1.bf16.msra.mxu1 %v1352_v8  ;;  %856 = vmatprep.mubr.f32.mxu1 %v1289_v7 }
 0x7ce   :  { %1160 = vmatprep.subr.bf16.mxu1 %v1354_v9 }
 0x7d1   :  { %1162 = vmatpush1.bf16.msra.mxu1 %v1376_v16 }
 0x7d2   :  { %1164 = vmatprep.subr.bf16.mxu1 %v1388_v22 }
 0x7d5   :  { %1166 = vmatpush1.bf16.msra.mxu1 %v1412_v32 }
 0x7d6   :  { %1168 = vmatprep.subr.bf16.mxu1 %v1415_v33 }
 0x7d9   :  { %1170 = vmatpush1.bf16.msra.mxu1 %v1427_v37 }
 0x89f   :  { %v652_v60 = vpop.f32.mrb[4].mxu1 }
 0x8a0   :  { %v653_v35 = vadd.f32 %v652_v60, %v1461_v46  ;;  %v654_v38 = vpop.f32.mrb[5].mxu1 }
 0x8a1   :  { %v655_v44 = vadd.f32 %v654_v38, %v1468_v56 }
 0x8a2   :  { %v657_v39 = vadd.f32 %v653_v35, %v1559_v34 }
 0x8a4   :  { %v1044_v40 = vmul.f32 -1.442695, %v657_v39 }
 0x8a6   :  { %1217 = vpow2.f32 %v1044_v40 }
 0x8b0   :  { %v1218_v41 = vpop.eup %1217 }
 0x8b1   :  { %v661_v42 = vadd.f32 1.0, %v1218_v41 }
 0x8b3   :  { %1219 = vrcp.f32 %v661_v42 }
 0x8bd   :  { %v1220_v45 = vpop.eup %1219 }
 0x8be   :  { %v664_v49 = vmul.f32 %v1220_v45, %v655_v44  ;;  %v667_v50 = vsub.f32 1.0, %v1220_v45  ;;  %v674_v52 = vmul.f32 %v1220_v45, %v581_v30 }
 0x8c0   :  { %v665_v43 = vadd.f32 %v664_v49, %v1566_v48 }
 0x8c2   :  { %1221 = vtanh.f32 %v665_v43 }
 0x8cc   :  { %v1222_v10 = vpop.eup %1221 }
 0x8cd   :  { %669 = vrot.lane.b32.xlu0 %v1222_v10, %s1290_s25 }
 0x93f   :  { %v670_v51 = vpop.permute.xlu0 %669 }
 0x940   :  { %v672_v53 = vmul.f32 %v670_v51, %v667_v50 }
 0x942   :  { %v675_v54 = vadd.f32 %v674_v52, %v672_v53 }
 0x944   :  { %677 = vrot.lane.b32.xlu1 %v675_v54, %s1290_s25 }
 0x9b6   :  { %v678_v55 = vpop.permute.xlu1 %677 }
 0x9b7   :  { %681 = vst.msk [vmem:[#allocation2 + $0x8] sm:$0x3] %vm255_vm1, %v678_v55  ;;  %1045 = vmatmul.mubr.msk.f32.vlgmr.msra.gmra.mrb[8].mxu0 %vm158_vm2, %v678_v55 }
 0x9b8   :  { %1174 = vmatpush1.bf16.msra.mxu0 %v1352_v8  ;;  %964 = vmatprep.mubr.f32.mxu0 %v1289_v7 }
 0x9b9   :  { %1176 = vmatprep.subr.bf16.mxu0 %v1354_v9 }
 0x9bc   :  { %1178 = vmatpush1.bf16.msra.mxu0 %v1376_v16 }
 0x9bd   :  { %1180 = vmatprep.subr.bf16.mxu0 %v1388_v22  ;;  %v777_v22 = vrot.slane %v675_v54, 6 }
 0x9c0   :  { %1182 = vmatpush1.bf16.msra.mxu0 %v1412_v32 }
 0x9c1   :  { %1184 = vmatprep.subr.bf16.mxu0 %v1415_v33 }
 0x9c4   :  { %1186 = vmatpush1.bf16.msra.mxu0 %v1427_v37 }
 0xa8a   :  { %v750_v57 = vpop.f32.mrb[8].mxu0 }
 0xa8b   :  { %v751_v11 = vadd.f32 %v750_v57, %v1461_v46  ;;  %v752_v58 = vpop.f32.mrb[9].mxu0 }
 0xa8c   :  { %v753_v16 = vadd.f32 %v752_v58, %v1468_v56 }
 0xa8d   :  { %v756_v59 = vrot.slane %v751_v11, 6 }
 0xa8e   :  { %v766_v32 = vrot.slane %v753_v16, 6 }
 0xa8f   :  { %v758_v8 = vadd.f32 %v756_v59, %v1559_v34 }
 0xa91   :  { %v1046_v7 = vmul.f32 -1.442695, %v758_v8 }
 0xa93   :  { %1223 = vpow2.f32 %v1046_v7 }
 0xa9d   :  { %v1224_v9 = vpop.eup %1223 }
 0xa9e   :  { %v762_v61 = vadd.f32 1.0, %v1224_v9 }
 0xaa0   :  { %1225 = vrcp.f32 %v762_v61 }
 0xaaa   :  { %v1226_v62 = vpop.eup %1225 }
 0xaab   :  { %v768_v33 = vmul.f32 %v1226_v62, %v766_v32  ;;  %v779_v63 = vmul.f32 %v1226_v62, %v777_v22  ;;  %v771_v2 = vsub.f32 1.0, %v1226_v62 }
 0xaad   :  { %v769_v37 = vadd.f32 %v768_v33, %v1566_v48 }
 0xaaf   :  { %1227 = vtanh.f32 %v769_v37 }
 0xab9   :  { %v1228_v0 = vpop.eup %1227 }
 0xaba   :  { %773 = vrot.lane.b32.xlu0 %v1228_v0, %s1290_s25 }
 0xb2c   :  { %v774_v4 = vpop.permute.xlu0 %773 }
 0xb2d   :  { %v776_v5 = vmul.f32 %v774_v4, %v771_v2 }
 0xb2f   :  { %v1586_v6 = vadd.f32 %v779_v63, %v776_v5 }
 0xb31   :  { %v787_v12 = vrot.slane %v1586_v6, 2  ;;  %v885_v30 = vrot.slane %v1586_v6, 6 }
 0xb33   :  { %788 = vrot.lane.b32.xlu1 %v787_v12, %s1290_s25 }
 0xba5   :  { %v789_v13 = vpop.permute.xlu1 %788 }
 0xba6   :  { %1047 = vmatmul.mubr.msk.f32.vlgmr.msra.gmra.mrb[6].mxu1 %vm158_vm2, %v789_v13 }
 0xc79   :  { %v858_v14 = vpop.f32.mrb[6].mxu1 }
 0xc7a   :  { %v859_v15 = vadd.f32 %v858_v14, %v1461_v46  ;;  %v860_v17 = vpop.f32.mrb[7].mxu1 }
 0xc7b   :  { %v861_v24 = vadd.f32 %v860_v17, %v1468_v56 }
 0xc7c   :  { %v864_v18 = vrot.slane %v859_v15, 4 }
 0xc7d   :  { %v874_v3 = vrot.slane %v861_v24, 4 }
 0xc7e   :  { %v866_v19 = vadd.f32 %v864_v18, %v1559_v34 }
 0xc80   :  { %v1048_v20 = vmul.f32 -1.442695, %v866_v19 }
 0xc82   :  { %1229 = vpow2.f32 %v1048_v20 }
 0xc8c   :  { %v1230_v21 = vpop.eup %1229 }
 0xc8d   :  { %v870_v23 = vadd.f32 1.0, %v1230_v21 }
 0xc8f   :  { %1231 = vrcp.f32 %v870_v23 }
 0xc99   :  { %v1232_v25 = vpop.eup %1231 }
 0xc9a   :  { %v876_v26 = vmul.f32 %v1232_v25, %v874_v3  ;;  %v879_v28 = vsub.f32 1.0, %v1232_v25  ;;  %v887_v60 = vmul.f32 %v1232_v25, %v885_v30 }
 0xc9c   :  { %v877_v47 = vadd.f32 %v876_v26, %v1566_v48 }
 0xc9e   :  { %1233 = vtanh.f32 %v877_v47 }
 0xca8   :  { %v1234_v27 = vpop.eup %1233 }
 0xca9   :  { %881 = vrot.lane.b32.xlu0 %v1234_v27, %s1290_s25 }
 0xd1b   :  { %v882_v31 = vpop.permute.xlu0 %881 }
 0xd1c   :  { %v884_v35 = vmul.f32 %v882_v31, %v879_v28 }
 0xd1e   :  { %v888_v38 = vadd.f32 %v887_v60, %v884_v35 }
 0xd20   :  { %v895_v39 = vrot.slane %v888_v38, 4  ;;  %v993_v54 = vrot.slane %v888_v38, 6 }
 0xd22   :  { %896 = vrot.lane.b32.xlu1 %v895_v39, %s1290_s25 }
 0xd26   :  { %357 = vrot.lane.b32.xlu1 %v1504_v36, %s1290_s25 }
 0xd2a   :  { %575 = vrot.lane.b32.xlu1 %v1544_v29, %s1290_s25 }
 0xd2e   :  { %890 = vrot.lane.b32.xlu1 %v888_v38, %s1290_s25 }
 0xd94   :  { %v897_v40 = vpop.permute.xlu1 %896 }
 0xd95   :  { %1049 = vmatmul.mubr.msk.f32.vlgmr.msra.gmra.mrb[10].mxu0 %vm158_vm2, %v897_v40 }
 0xd98   :  { %v358_v41 = vpop.permute.xlu1 %357 }
 0xd99   :  { %362 = vst.msk [vmem:[#allocation2] sm:$0xc] %vm361_vm3, %v358_v41 }
 0xd9c   :  { %v576_v42 = vpop.permute.xlu1 %575 }
 0xd9d   :  { %580 = vst.msk [vmem:[#allocation2] sm:$0xc0] %vm579_vm4, %v576_v42 }
 0xda0   :  { %v891_v44 = vpop.permute.xlu1 %890 }
 0xda1   :  { %894 = vst.msk [vmem:[#allocation2 + $0x8] sm:$0x30] %vm470_vm5, %v891_v44 }
 0xe68   :  { %v966_v36 = vpop.f32.mrb[10].mxu0 }
 0xe69   :  { %v967_v29 = vadd.f32 %v966_v36, %v1461_v46  ;;  %v968_v45 = vpop.f32.mrb[11].mxu0 }
 0xe6a   :  { %v969_v52 = vadd.f32 %v968_v45, %v1468_v56 }
 0xe6b   :  { %v972_v49 = vrot.slane %v967_v29, 2 }
 0xe6c   :  { %v982_v53 = vrot.slane %v969_v52, 2 }
 0xe6d   :  { %v974_v43 = vadd.f32 %v972_v49, %v1559_v34 }
 0xe6f   :  { %v1050_v10 = vmul.f32 -1.442695, %v974_v43 }
 0xe71   :  { %1235 = vpow2.f32 %v1050_v10 }
 0xe7b   :  { %v1236_v50 = vpop.eup %1235 }
 0xe7c   :  { %v978_v51 = vadd.f32 1.0, %v1236_v50 }
 0xe7e   :  { %1237 = vrcp.f32 %v978_v51 }
 0xe88   :  { %v1238_v55 = vpop.eup %1237 }
 0xe89   :  { %v984_v57 = vmul.f32 %v1238_v55, %v982_v53  ;;  %v995_v11 = vmul.f32 %v1238_v55, %v993_v54  ;;  %v987_v34 = vsub.f32 1.0, %v1238_v55 }
 0xe8b   :  { %v985_v58 = vadd.f32 %v984_v57, %v1566_v48 }
 0xe8d   :  { %1239 = vtanh.f32 %v985_v58 }
 0xe97   :  { %v1240_v46 = vpop.eup %1239 }
 0xe98   :  { %989 = vrot.lane.b32.xlu0 %v1240_v46, %s1290_s25 }
 0xe9c   :  { %466 = vrot.lane.b32.xlu0 %v1524_v1, %s1290_s25 }
 0xea0   :  { %782 = vrot.lane.b32.xlu0 %v1586_v6, %s1290_s25 }
 0xf0a   :  { %v990_v59 = vpop.permute.xlu0 %989 }
 0xf0b   :  { %v992_v56 = vmul.f32 %v990_v59, %v987_v34 }
 0xf0d   :  { %v996_v8 = vadd.f32 %v995_v11, %v992_v56 }
 0xf0e   :  { %v467_v7 = vpop.permute.xlu0 %466 }
 0xf0f   :  { %471 = vst.msk [vmem:[#allocation2] sm:$0x30] %vm470_vm5, %v467_v7  ;;  %998 = vrot.lane.b32.xlu0 %v996_v8, %s1290_s25 }
 0xf12   :  { %v783_v48 = vpop.permute.xlu0 %782 }
 0xf13   :  { %786 = vst.msk [vmem:[#allocation2 + $0x8] sm:$0xc] %vm361_vm3, %v783_v48 }
 0xf81   :  { %v999_v1 = vpop.permute.xlu0 %998 }
 0xf82   :  { %1002 = vst.msk [vmem:[#allocation2 + $0x8] sm:$0xc0] %vm579_vm4, %v999_v1  ;;  %1003 = vst.msk [vmem:[#allocation4 - $0x6] sm:$0xc0] %vm579_vm4, %v999_v1 }
 0xf83   :  { %1252 = shalt.err (!%p1249_p4)
}
 0xf84   :  { %s1253_s8 = scalar_lea.hbm %s1657_s5, 256 }
 0xf85   :  { %p1254_p5 = scmp.ne.s32.totalorder %s1657_s5, %s1253_s8  ;;  %p1257_p6 = scmp.lt.u32.totalorder %s1253_s8, %s1657_s5 }
 0xf87   :  { %p1259_p7 = pnand %p1257_p6, %p1254_p5 }
 0xf89   :  { %1262 = shalt.err (!%p1259_p7)
}
 0xf8a   :  { %s1293_s13 = smov 32   ;;  %s1294_s14 = smov 2  }
 0xf8b   :  { %1015 = dma.vmem_to_hbm [thread:$0]  %s1010_s26, 256, %s1657_s5, [#allocation3], %s1293_s13, %s1293_s13, %s1294_s14  }
 0xf8c   :  { %s1263_s1 = scalar_lea.vmem %s1619_s28, 32  ;;  %p1268_p9 = scmp.lt.s32.totalorder %s1619_s28, %s1619_s28 }
 0xf8d   :  { %p1264_p8 = scmp.ne.s32.totalorder %s1619_s28, %s1263_s1  ;;  %p1269_p10 = scmp.lt.s32.totalorder %s1263_s1, %s1263_s1 }
 0xf8f   :  { %p1270_p11 = por %p1269_p10, %p1268_p9 }
 0xf91   :  { %p1271_p12 = pnand %p1270_p11, %p1264_p8 }
 0xf93   :  { %1274 = shalt.err (!%p1271_p12)
}
 0xf94   :  { %s1275_s19 = scalar_lea.hbm %s1658_s6, 32 }
 0xf95   :  { %p1276_p13 = scmp.ne.s32.totalorder %s1658_s6, %s1275_s19  ;;  %p1279_p0 = scmp.lt.u32.totalorder %s1275_s19, %s1658_s6 }
 0xf97   :  { %p1281_p1 = pnand %p1279_p0, %p1276_p13 }
 0xf99   :  { %1284 = shalt.err (!%p1281_p1)
}
 0xf9a   :  { %1025 = dma.vmem_to_hbm [thread:$0]  %s1619_s28, 32, %s1658_s6, [#allocation5]  }
 0xf9b   :  { %1285 = dma.done.wait [#allocation3], 256  }
 0xf9c   :  { %1286 = vsyncadd [#allocation3], 4294967040 }
 0xf9d   :  { %1287 = dma.done.wait [#allocation5], 32  }
 0xf9e   :  { %1288 = vsyncadd [#allocation5], 4294967264 }
 0xf9f   :  { %1032 = vsyncpa [#allocation3], 1 }
 0xfa0   :  { %1033 = vsyncpa [#allocation5], 1 }

</bundles_post_ra>
